<compile_context>
chip_gen: v7x
topology: tpu7x:2x2x1
jax: 0.10.0
libtpu: 0.0.40
codegen_flags: <defaults>
</compile_context>

<pallas_src>
import jax
import jax.numpy as jnp
import numpy as np
from jax.experimental import pallas as pl
from jax.experimental.pallas import tpu as pltpu


# ---------------------------------------------------------------------------
# Kernel: fused maxpool2x2 -> conv3x3+BN+ReLU -> conv3x3+BN+ReLU (one image)
# ---------------------------------------------------------------------------
def _down_block_kernel(x_ref, w1_ref, b1_ref, w2_ref, b2_ref, o_ref,
                       pad1_ref, pad2_ref):
    # x_ref  : (1, Hp, 2, Wp, 2*Cin)  one image, 2x2 pool window folded into dims
    # w1_ref : (9*Cin, C1)            conv1 weights, taps flattened into K, BN folded
    # b1_ref : (1, C1)                conv1 bias (+BN shift)
    # w2_ref : (9*C1, C1)             conv2 weights
    # b2_ref : (1, C1)                conv2 bias
    # o_ref  : (1, Hp, Wp, C1)
    # pad1_ref: VMEM (Hp+2, Wp+2, Cin) zero-padded pooled activation
    # pad2_ref: VMEM (Hp+2, Wp+2, C1)  zero-padded conv1 activation
    Hp, Wp, C1 = o_ref.shape[1], o_ref.shape[2], o_ref.shape[3]
    Cin = pad1_ref.shape[2]

    # ---- fused 2x2 max-pool (VPU, no HBM round trip) ------------------------
    x = x_ref[0]                                           # (Hp, 2, Wp, 2*Cin)
    xr = jnp.maximum(x[:, 0], x[:, 1])                     # max over window rows
    pooled = jnp.maximum(xr[:, :, :Cin], xr[:, :, Cin:])   # max over window cols

    # zero halo + interior write (conv padding=1)
    pad1_ref[...] = jnp.zeros(pad1_ref.shape, pad1_ref.dtype)
    pad1_ref[1:Hp + 1, 1:Wp + 1, :] = pooled.astype(pad1_ref.dtype)

    def conv_bn_relu(pad_ref, w_ref, b_ref, cin):
        # im2col: 9 shifted taps flattened into the contraction dim (K = 9*cin)
        taps = [pad_ref[dy:dy + Hp, dx:dx + Wp, :].reshape(Hp * Wp, cin)
                for dy in range(3) for dx in range(3)]
        xmat = jnp.concatenate(taps, axis=1)               # (Hp*Wp, 9*cin)
        acc = jnp.dot(xmat, w_ref[...],
                      preferred_element_type=jnp.float32)  # single MXU push
        return jnp.maximum(acc + b_ref[...], 0.0)          # bias (+BN shift) + ReLU

    h1 = conv_bn_relu(pad1_ref, w1_ref, b1_ref, Cin)       # (Hp*Wp, C1)

    pad2_ref[...] = jnp.zeros(pad2_ref.shape, pad2_ref.dtype)
    pad2_ref[1:Hp + 1, 1:Wp + 1, :] = h1.reshape(Hp, Wp, C1)

    h2 = conv_bn_relu(pad2_ref, w2_ref, b2_ref, C1)        # (Hp*Wp, C1)
    o_ref[0] = h2.reshape(Hp, Wp, C1).astype(o_ref.dtype)


# ---------------------------------------------------------------------------
# Wrapper (glue only: boundary transposes + free reshapes)
# ---------------------------------------------------------------------------
def down_block(x_nchw, params):
    """DownBlock.forward: max_pool2d(2,2) -> ConvBNReLU -> ConvBNReLU (NCHW io)."""
    N, Cin, H, W = x_nchw.shape
    assert H % 2 == 0 and W % 2 == 0, "max_pool2d(2,2) expects even H and W"
    Hp, Wp = H // 2, W // 2
    C1 = params["b1"].shape[0]

    x = jnp.transpose(x_nchw, (0, 2, 3, 1))                # NCHW -> NHWC
    # Free row-major reshape: fold each 2x2 pooling window into trailing dims.
    x = x.reshape(N, Hp, 2, Wp, 2 * Cin)

    w1 = params["w1"].reshape(9 * Cin, C1)                 # taps into K
    w2 = params["w2"].reshape(9 * C1, C1)
    b1 = params["b1"].reshape(1, C1)
    b2 = params["b2"].reshape(1, C1)

    out = pl.pallas_call(
        _down_block_kernel,
        grid=(N,),
        in_specs=[
            pl.BlockSpec((1, Hp, 2, Wp, 2 * Cin), lambda n: (n, 0, 0, 0, 0)),
            pl.BlockSpec((9 * Cin, C1), lambda n: (0, 0)),
            pl.BlockSpec((1, C1), lambda n: (0, 0)),
            pl.BlockSpec((9 * C1, C1), lambda n: (0, 0)),
            pl.BlockSpec((1, C1), lambda n: (0, 0)),
        ],
        out_specs=pl.BlockSpec((1, Hp, Wp, C1), lambda n: (n, 0, 0, 0)),
        out_shape=jax.ShapeDtypeStruct((N, Hp, Wp, C1), x_nchw.dtype),
        scratch_shapes=[
            pltpu.VMEM((Hp + 2, Wp + 2, Cin), jnp.float32),
            pltpu.VMEM((Hp + 2, Wp + 2, C1), jnp.float32),
        ],
        compiler_params=pltpu.CompilerParams(
            dimension_semantics=("parallel",),          # >=2 steps -> 2 v7x TCs
            vmem_limit_bytes=32 * 1024 * 1024,          # safe on v5e/v6e/v7x
        ),
    )(x, w1, b1, w2, b2)

    return jnp.transpose(out, (0, 3, 1, 2))                # NHWC -> NCHW


# ---------------------------------------------------------------------------
# Deterministic parameter construction (matches nn.Conv2d/nn.BatchNorm2d shapes)
# ---------------------------------------------------------------------------
def _make_conv_bn(key, cin, cout, eps=1e-5):
    kw, kb = jax.random.split(key)
    fan_in = cin * 9
    bound = 1.0 / float(np.sqrt(fan_in))
    w = jax.random.uniform(kw, (3, 3, cin, cout), jnp.float32, -bound, bound)
    b = jax.random.uniform(kb, (cout,), jnp.float32, -bound, bound)
    # BatchNorm2d fresh-init state, inference mode, folded into conv:
    gamma = jnp.ones((cout,), jnp.float32)
    beta = jnp.zeros((cout,), jnp.float32)
    mean = jnp.zeros((cout,), jnp.float32)
    var = jnp.ones((cout,), jnp.float32)
    scale = gamma / jnp.sqrt(var + eps)
    w_f = (w * scale).reshape(9, cin, cout)                # (9, Cin, Cout)
    b_f = (b - mean) * scale + beta
    return w_f, b_f


def init_params(key, in_ch, out_ch):
    k1, k2 = jax.random.split(key)
    w1, b1 = _make_conv_bn(k1, in_ch, out_ch)
    w2, b2 = _make_conv_bn(k2, out_ch, out_ch)
    return {"w1": w1, "b1": b1, "w2": w2, "b2": b2}


# ---------------------------------------------------------------------------
# Pure-JAX reference (for correctness check)
# ---------------------------------------------------------------------------
def _ref_down_block(x_nchw, params):
    N, C, H, W = x_nchw.shape
    x = x_nchw.reshape(N, C, H // 2, 2, W // 2, 2).max(axis=(3, 5))  # maxpool

    def conv(x, w_f, b_f):
        cin, cout = w_f.shape[1], w_f.shape[2]
        w_oihw = jnp.transpose(w_f.reshape(3, 3, cin, cout), (3, 2, 0, 1))
        y = jax.lax.conv_general_dilated(
            x, w_oihw, window_strides=(1, 1), padding="SAME",
            dimension_numbers=("NCHW", "OIHW", "NCHW"))
        return jnp.maximum(y + b_f[None, :, None, None], 0.0)

    x = conv(x, params["w1"], params["b1"])
    x = conv(x, params["w2"], params["b2"])
    return x


# ---------------------------------------------------------------------------
if __name__ == "__main__":
    key = jax.random.PRNGKey(0)
    kx, kp = jax.random.split(key)

    in_ch, out_ch = 4, 8
    x = jax.random.normal(kx, (2, in_ch, 16, 16), jnp.float32)   # NCHW input
    params = init_params(kp, in_ch, out_ch)

    out = jax.jit(down_block)(x, params)
    out = jax.block_until_ready(out)

    assert out.shape == (2, out_ch, 8, 8), out.shape

    ref = jax.block_until_ready(_ref_down_block(x, params))
    np.testing.assert_allclose(np.asarray(out), np.asarray(ref),
                               rtol=2e-2, atol=2e-2)

    print("KERNEL_OK")
</pallas_src>

<mosaic_0001>
module attributes {stable_mosaic.version = 11 : i64} {
  func.func @_down_block_kernel(%arg0: i32, %arg1: memref<1x8x2x8x8xf32, #tpu.memory_space<vmem>>, %arg2: memref<36x8xf32, #tpu.memory_space<vmem>>, %arg3: memref<1x8xf32, #tpu.memory_space<vmem>>, %arg4: memref<72x8xf32, #tpu.memory_space<vmem>>, %arg5: memref<1x8xf32, #tpu.memory_space<vmem>>, %arg6: memref<1x8x8x8xf32, #tpu.memory_space<vmem>>, %arg7: memref<10x10x4xf32, #tpu.memory_space<vmem>>, %arg8: memref<10x10x8xf32, #tpu.memory_space<vmem>>) attributes {dimension_semantics = [#tpu.dimension_semantics<parallel>], iteration_bounds = array<i64: 2>, scalar_prefetch = 0 : i64, scratch_operands = 2 : i64, tpu.core_type = #tpu.core_type<tc>, window_params = [{transform_indices = @transform_0, window_bounds = array<i64: 1, 8, 2, 8, 8>}, {pipeline_mode = #tpu.pipeline_mode<synchronous>, transform_indices = @transform_1, window_bounds = array<i64: 36, 8>}, {pipeline_mode = #tpu.pipeline_mode<synchronous>, transform_indices = @transform_2, window_bounds = array<i64: 1, 8>}, {pipeline_mode = #tpu.pipeline_mode<synchronous>, transform_indices = @transform_3, window_bounds = array<i64: 72, 8>}, {pipeline_mode = #tpu.pipeline_mode<synchronous>, transform_indices = @transform_4, window_bounds = array<i64: 1, 8>}, {transform_indices = @transform_5, window_bounds = array<i64: 1, 8, 8, 8>}]} {
    %c0 = arith.constant 0 : index
    %c0_0 = arith.constant 0 : index
    %c0_1 = arith.constant 0 : index
    %c0_2 = arith.constant 0 : index
    %c0_3 = arith.constant 0 : index
    %0 = vector.load %arg1[%c0, %c0_0, %c0_1, %c0_2, %c0_3] : memref<1x8x2x8x8xf32, #tpu.memory_space<vmem>>, vector<1x8x2x8x8xf32>
    %1 = vector.shape_cast %0 : vector<1x8x2x8x8xf32> to vector<8x2x8x8xf32>
    %2 = vector.extract_strided_slice %1 {offsets = [0, 0, 0, 0], sizes = [8, 1, 8, 8], strides = [1, 1, 1, 1]} : vector<8x2x8x8xf32> to vector<8x1x8x8xf32>
    %3 = vector.shape_cast %2 : vector<8x1x8x8xf32> to vector<8x8x8xf32>
    %4 = vector.extract_strided_slice %1 {offsets = [0, 1, 0, 0], sizes = [8, 1, 8, 8], strides = [1, 1, 1, 1]} : vector<8x2x8x8xf32> to vector<8x1x8x8xf32>
    %5 = vector.shape_cast %4 : vector<8x1x8x8xf32> to vector<8x8x8xf32>
    %6 = arith.maximumf %3, %5 : vector<8x8x8xf32>
    %7 = vector.extract_strided_slice %6 {offsets = [0, 0, 0], sizes = [8, 8, 4], strides = [1, 1, 1]} : vector<8x8x8xf32> to vector<8x8x4xf32>
    %8 = vector.extract_strided_slice %6 {offsets = [0, 0, 4], sizes = [8, 8, 4], strides = [1, 1, 1]} : vector<8x8x8xf32> to vector<8x8x4xf32>
    %9 = arith.maximumf %7, %8 : vector<8x8x4xf32>
    %cst = arith.constant 0.000000e+00 : f32
    %10 = vector.broadcast %cst : f32 to vector<10x10x4xf32>
    %c0_4 = arith.constant 0 : index
    %c0_5 = arith.constant 0 : index
    %c0_6 = arith.constant 0 : index
    %11 = vector.load %arg7[%c0_4, %c0_5, %c0_6] : memref<10x10x4xf32, #tpu.memory_space<vmem>>, vector<10x10x4xf32>
    tpu.vector_store %arg7[%c0_4, %c0_5, %c0_6], %10 {strides = array<i32>} : memref<10x10x4xf32, #tpu.memory_space<vmem>>, vector<10x10x4xf32>,
    %c1 = arith.constant 1 : index
    %c1_7 = arith.constant 1 : index
    %c0_8 = arith.constant 0 : index
    %12 = vector.load %arg7[%c1, %c1_7, %c0_8] : memref<10x10x4xf32, #tpu.memory_space<vmem>>, vector<8x8x4xf32>
    tpu.vector_store %arg7[%c1, %c1_7, %c0_8], %9 {strides = array<i32>} : memref<10x10x4xf32, #tpu.memory_space<vmem>>, vector<8x8x4xf32>,
    %c0_9 = arith.constant 0 : index
    %c0_10 = arith.constant 0 : index
    %c0_11 = arith.constant 0 : index
    %13 = vector.load %arg7[%c0_9, %c0_10, %c0_11] : memref<10x10x4xf32, #tpu.memory_space<vmem>>, vector<8x8x4xf32>
    %14 = vector.shape_cast %13 : vector<8x8x4xf32> to vector<64x4xf32>
    %c0_12 = arith.constant 0 : index
    %c1_13 = arith.constant 1 : index
    %c0_14 = arith.constant 0 : index
    %15 = vector.load %arg7[%c0_12, %c1_13, %c0_14] : memref<10x10x4xf32, #tpu.memory_space<vmem>>, vector<8x8x4xf32>
    %16 = vector.shape_cast %15 : vector<8x8x4xf32> to vector<64x4xf32>
    %c0_15 = arith.constant 0 : index
    %c2 = arith.constant 2 : index
    %c0_16 = arith.constant 0 : index
    %17 = vector.load %arg7[%c0_15, %c2, %c0_16] : memref<10x10x4xf32, #tpu.memory_space<vmem>>, vector<8x8x4xf32>
    %18 = vector.shape_cast %17 : vector<8x8x4xf32> to vector<64x4xf32>
    %c1_17 = arith.constant 1 : index
    %c0_18 = arith.constant 0 : index
    %c0_19 = arith.constant 0 : index
    %19 = vector.load %arg7[%c1_17, %c0_18, %c0_19] : memref<10x10x4xf32, #tpu.memory_space<vmem>>, vector<8x8x4xf32>
    %20 = vector.shape_cast %19 : vector<8x8x4xf32> to vector<64x4xf32>
    %c1_20 = arith.constant 1 : index
    %c1_21 = arith.constant 1 : index
    %c0_22 = arith.constant 0 : index
    %21 = vector.load %arg7[%c1_20, %c1_21, %c0_22] : memref<10x10x4xf32, #tpu.memory_space<vmem>>, vector<8x8x4xf32>
    %22 = vector.shape_cast %21 : vector<8x8x4xf32> to vector<64x4xf32>
    %c1_23 = arith.constant 1 : index
    %c2_24 = arith.constant 2 : index
    %c0_25 = arith.constant 0 : index
    %23 = vector.load %arg7[%c1_23, %c2_24, %c0_25] : memref<10x10x4xf32, #tpu.memory_space<vmem>>, vector<8x8x4xf32>
    %24 = vector.shape_cast %23 : vector<8x8x4xf32> to vector<64x4xf32>
    %c2_26 = arith.constant 2 : index
    %c0_27 = arith.constant 0 : index
    %c0_28 = arith.constant 0 : index
    %25 = vector.load %arg7[%c2_26, %c0_27, %c0_28] : memref<10x10x4xf32, #tpu.memory_space<vmem>>, vector<8x8x4xf32>
    %26 = vector.shape_cast %25 : vector<8x8x4xf32> to vector<64x4xf32>
    %c2_29 = arith.constant 2 : index
    %c1_30 = arith.constant 1 : index
    %c0_31 = arith.constant 0 : index
    %27 = vector.load %arg7[%c2_29, %c1_30, %c0_31] : memref<10x10x4xf32, #tpu.memory_space<vmem>>, vector<8x8x4xf32>
    %28 = vector.shape_cast %27 : vector<8x8x4xf32> to vector<64x4xf32>
    %c2_32 = arith.constant 2 : index
    %c2_33 = arith.constant 2 : index
    %c0_34 = arith.constant 0 : index
    %29 = vector.load %arg7[%c2_32, %c2_33, %c0_34] : memref<10x10x4xf32, #tpu.memory_space<vmem>>, vector<8x8x4xf32>
    %30 = vector.shape_cast %29 : vector<8x8x4xf32> to vector<64x4xf32>
    %31 = tpu.concatenate %14, %16, %18, %20, %22, %24, %26, %28, %30 in 1 : vector<64x4xf32>, vector<64x4xf32>, vector<64x4xf32>, vector<64x4xf32>, vector<64x4xf32>, vector<64x4xf32>, vector<64x4xf32>, vector<64x4xf32>, vector<64x4xf32> -> vector<64x36xf32>
    %c0_35 = arith.constant 0 : index
    %c0_36 = arith.constant 0 : index
    %32 = vector.load %arg2[%c0_35, %c0_36] : memref<36x8xf32, #tpu.memory_space<vmem>>, vector<36x8xf32>
    %cst_37 = arith.constant dense<0.000000e+00> : vector<64x8xf32>
    %33 = tpu.matmul %31, %32, %cst_37 {dimension_numbers = #tpu.dot_dimension_numbers<[1], [0], [0], [1], [0, 0, 1, 1], [], []>} : vector<64x36xf32>, vector<36x8xf32>, vector<64x8xf32> -> vector<64x8xf32>
    %c0_38 = arith.constant 0 : index
    %c0_39 = arith.constant 0 : index
    %34 = vector.load %arg3[%c0_38, %c0_39] : memref<1x8xf32, #tpu.memory_space<vmem>>, vector<1x8xf32>
    %35 = vector.broadcast %34 : vector<1x8xf32> to vector<64x8xf32>
    %36 = arith.addf %33, %35 : vector<64x8xf32>
    %cst_40 = arith.constant 0.000000e+00 : f32
    %37 = vector.broadcast %cst_40 : f32 to vector<64x8xf32>
    %38 = arith.maximumf %36, %37 : vector<64x8xf32>
    %cst_41 = arith.constant 0.000000e+00 : f32
    %39 = vector.broadcast %cst_41 : f32 to vector<10x10x8xf32>
    %c0_42 = arith.constant 0 : index
    %c0_43 = arith.constant 0 : index
    %c0_44 = arith.constant 0 : index
    %40 = vector.load %arg8[%c0_42, %c0_43, %c0_44] : memref<10x10x8xf32, #tpu.memory_space<vmem>>, vector<10x10x8xf32>
    tpu.vector_store %arg8[%c0_42, %c0_43, %c0_44], %39 {strides = array<i32>} : memref<10x10x8xf32, #tpu.memory_space<vmem>>, vector<10x10x8xf32>,
    %41 = vector.shape_cast %38 : vector<64x8xf32> to vector<8x8x8xf32>
    %c1_45 = arith.constant 1 : index
    %c1_46 = arith.constant 1 : index
    %c0_47 = arith.constant 0 : index
    %42 = vector.load %arg8[%c1_45, %c1_46, %c0_47] : memref<10x10x8xf32, #tpu.memory_space<vmem>>, vector<8x8x8xf32>
    tpu.vector_store %arg8[%c1_45, %c1_46, %c0_47], %41 {strides = array<i32>} : memref<10x10x8xf32, #tpu.memory_space<vmem>>, vector<8x8x8xf32>,
    %c0_48 = arith.constant 0 : index
    %c0_49 = arith.constant 0 : index
    %c0_50 = arith.constant 0 : index
    %43 = vector.load %arg8[%c0_48, %c0_49, %c0_50] : memref<10x10x8xf32, #tpu.memory_space<vmem>>, vector<8x8x8xf32>
    %44 = vector.shape_cast %43 : vector<8x8x8xf32> to vector<64x8xf32>
    %c0_51 = arith.constant 0 : index
    %c1_52 = arith.constant 1 : index
    %c0_53 = arith.constant 0 : index
    %45 = vector.load %arg8[%c0_51, %c1_52, %c0_53] : memref<10x10x8xf32, #tpu.memory_space<vmem>>, vector<8x8x8xf32>
    %46 = vector.shape_cast %45 : vector<8x8x8xf32> to vector<64x8xf32>
    %c0_54 = arith.constant 0 : index
    %c2_55 = arith.constant 2 : index
    %c0_56 = arith.constant 0 : index
    %47 = vector.load %arg8[%c0_54, %c2_55, %c0_56] : memref<10x10x8xf32, #tpu.memory_space<vmem>>, vector<8x8x8xf32>
    %48 = vector.shape_cast %47 : vector<8x8x8xf32> to vector<64x8xf32>
    %c1_57 = arith.constant 1 : index
    %c0_58 = arith.constant 0 : index
    %c0_59 = arith.constant 0 : index
    %49 = vector.load %arg8[%c1_57, %c0_58, %c0_59] : memref<10x10x8xf32, #tpu.memory_space<vmem>>, vector<8x8x8xf32>
    %50 = vector.shape_cast %49 : vector<8x8x8xf32> to vector<64x8xf32>
    %c1_60 = arith.constant 1 : index
    %c1_61 = arith.constant 1 : index
    %c0_62 = arith.constant 0 : index
    %51 = vector.load %arg8[%c1_60, %c1_61, %c0_62] : memref<10x10x8xf32, #tpu.memory_space<vmem>>, vector<8x8x8xf32>
    %52 = vector.shape_cast %51 : vector<8x8x8xf32> to vector<64x8xf32>
    %c1_63 = arith.constant 1 : index
    %c2_64 = arith.constant 2 : index
    %c0_65 = arith.constant 0 : index
    %53 = vector.load %arg8[%c1_63, %c2_64, %c0_65] : memref<10x10x8xf32, #tpu.memory_space<vmem>>, vector<8x8x8xf32>
    %54 = vector.shape_cast %53 : vector<8x8x8xf32> to vector<64x8xf32>
    %c2_66 = arith.constant 2 : index
    %c0_67 = arith.constant 0 : index
    %c0_68 = arith.constant 0 : index
    %55 = vector.load %arg8[%c2_66, %c0_67, %c0_68] : memref<10x10x8xf32, #tpu.memory_space<vmem>>, vector<8x8x8xf32>
    %56 = vector.shape_cast %55 : vector<8x8x8xf32> to vector<64x8xf32>
    %c2_69 = arith.constant 2 : index
    %c1_70 = arith.constant 1 : index
    %c0_71 = arith.constant 0 : index
    %57 = vector.load %arg8[%c2_69, %c1_70, %c0_71] : memref<10x10x8xf32, #tpu.memory_space<vmem>>, vector<8x8x8xf32>
    %58 = vector.shape_cast %57 : vector<8x8x8xf32> to vector<64x8xf32>
    %c2_72 = arith.constant 2 : index
    %c2_73 = arith.constant 2 : index
    %c0_74 = arith.constant 0 : index
    %59 = vector.load %arg8[%c2_72, %c2_73, %c0_74] : memref<10x10x8xf32, #tpu.memory_space<vmem>>, vector<8x8x8xf32>
    %60 = vector.shape_cast %59 : vector<8x8x8xf32> to vector<64x8xf32>
    %61 = tpu.concatenate %44, %46, %48, %50, %52, %54, %56, %58, %60 in 1 : vector<64x8xf32>, vector<64x8xf32>, vector<64x8xf32>, vector<64x8xf32>, vector<64x8xf32>, vector<64x8xf32>, vector<64x8xf32>, vector<64x8xf32>, vector<64x8xf32> -> vector<64x72xf32>
    %c0_75 = arith.constant 0 : index
    %c0_76 = arith.constant 0 : index
    %62 = vector.load %arg4[%c0_75, %c0_76] : memref<72x8xf32, #tpu.memory_space<vmem>>, vector<72x8xf32>
    %cst_77 = arith.constant dense<0.000000e+00> : vector<64x8xf32>
    %63 = tpu.matmul %61, %62, %cst_77 {dimension_numbers = #tpu.dot_dimension_numbers<[1], [0], [0], [1], [0, 0, 1, 1], [], []>} : vector<64x72xf32>, vector<72x8xf32>, vector<64x8xf32> -> vector<64x8xf32>
    %c0_78 = arith.constant 0 : index
    %c0_79 = arith.constant 0 : index
    %64 = vector.load %arg5[%c0_78, %c0_79] : memref<1x8xf32, #tpu.memory_space<vmem>>, vector<1x8xf32>
    %65 = vector.broadcast %64 : vector<1x8xf32> to vector<64x8xf32>
    %66 = arith.addf %63, %65 : vector<64x8xf32>
    %cst_80 = arith.constant 0.000000e+00 : f32
    %67 = vector.broadcast %cst_80 : f32 to vector<64x8xf32>
    %68 = arith.maximumf %66, %67 : vector<64x8xf32>
    %69 = vector.shape_cast %68 : vector<64x8xf32> to vector<8x8x8xf32>
    %c0_81 = arith.constant 0 : index
    %c0_82 = arith.constant 0 : index
    %c0_83 = arith.constant 0 : index
    %c0_84 = arith.constant 0 : index
    %70 = vector.load %arg6[%c0_81, %c0_82, %c0_83, %c0_84] : memref<1x8x8x8xf32, #tpu.memory_space<vmem>>, vector<1x8x8x8xf32>
    %71 = vector.shape_cast %70 : vector<1x8x8x8xf32> to vector<8x8x8xf32>
    %72 = vector.shape_cast %69 : vector<8x8x8xf32> to vector<1x8x8x8xf32>
    tpu.vector_store %arg6[%c0_81, %c0_82, %c0_83, %c0_84], %72 {strides = array<i32>} : memref<1x8x8x8xf32, #tpu.memory_space<vmem>>, vector<1x8x8x8xf32>,
    return
  }
  func.func @transform_0(%arg0: i32) -> (i32, i32, i32, i32, i32) {
    %c0_i32 = arith.constant 0 : i32
    %c0_i32_0 = arith.constant 0 : i32
    %c0_i32_1 = arith.constant 0 : i32
    %c0_i32_2 = arith.constant 0 : i32
    %c0_i32_3 = arith.constant 0 : i32
    return %arg0, %c0_i32, %c0_i32_0, %c0_i32_1, %c0_i32_2 : i32, i32, i32, i32, i32
  }
  func.func @transform_1(%arg0: i32) -> (i32, i32) {
    %c0_i32 = arith.constant 0 : i32
    %c0_i32_0 = arith.constant 0 : i32
    %c0_i32_1 = arith.constant 0 : i32
    return %c0_i32, %c0_i32_0 : i32, i32
  }
  func.func @transform_2(%arg0: i32) -> (i32, i32) {
    %c0_i32 = arith.constant 0 : i32
    %c0_i32_0 = arith.constant 0 : i32
    %c0_i32_1 = arith.constant 0 : i32
    return %c0_i32, %c0_i32_0 : i32, i32
  }
  func.func @transform_3(%arg0: i32) -> (i32, i32) {
    %c0_i32 = arith.constant 0 : i32
    %c0_i32_0 = arith.constant 0 : i32
    %c0_i32_1 = arith.constant 0 : i32
    return %c0_i32, %c0_i32_0 : i32, i32
  }
  func.func @transform_4(%arg0: i32) -> (i32, i32) {
    %c0_i32 = arith.constant 0 : i32
    %c0_i32_0 = arith.constant 0 : i32
    %c0_i32_1 = arith.constant 0 : i32
    return %c0_i32, %c0_i32_0 : i32, i32
  }
  func.func @transform_5(%arg0: i32) -> (i32, i32, i32, i32) {
    %c0_i32 = arith.constant 0 : i32
    %c0_i32_0 = arith.constant 0 : i32
    %c0_i32_1 = arith.constant 0 : i32
    %c0_i32_2 = arith.constant 0 : i32
    return %arg0, %c0_i32, %c0_i32_0, %c0_i32_1 : i32, i32, i32, i32
  }
}

</mosaic_0001>

<bundles_post_ra>
// kernel: down_block.1
= control target key start
LH: loop header
LB: loop body
LE: loop exit
PB: predicated region body
PF: predicated region fallthrough
CT: control target
= control target key end

     0   :  { %s1730_s18 = smov 0   ;;  %s2267_s0 = inlined_call_operand.vmem [shape: f32[2,8,2,8,8], index: 0, kind: input, shape index: {}]   ;;  %s2268_s1 = inlined_call_operand.vmem [shape: f32[36,8], index: 1, kind: input, shape index: {}]   ;;  %s2269_s2 = inlined_call_operand.vmem [shape: f32[1,8], index: 2, kind: input, shape index: {}]   ;;  %s2270_s3 = inlined_call_operand.vmem [shape: f32[72,8], index: 3, kind: input, shape index: {}]   ;;  %s2271_s4 = inlined_call_operand.vmem [shape: f32[1,8], index: 4, kind: input, shape index: {}]   ;;  %s2272_s5 = inlined_call_operand.vmem [shape: f32[2,8,8,8], index: 5, kind: output, shape index: {}]  }
   0x1 LB: > { %s1518_s19 = sadd.s32 4294967295, %s1684_s18   ;;  %p1522_p0 = scmp.ge.s32.totalorder %s1684_s18, 1  ;;  %s1684_s18 = sphi %s1730_s18, %s15_s18  }
   0x2   : > { %p187_p1 = scmp.lt.s32.totalorder %s1684_s18, 3 }
   0x4   : > { %p188_p2 = pnand %p1522_p0, %p187_p1 }
   0x5   : > { %p1738_p3 = scmp.lt.s32.totalorder (!%p188_p2), %s1518_s19, 1  ;;  %vm289_vm0 = vcmask (!%p188_p2), 31744   ;;  %vm291_vm1 = vcmask (!%p188_p2), 25600   ;;  %v1686_v0 = vmov (!%p188_p2), 0.0   ;;  %s1687_s25 = smov (!%p188_p2), 124   ;;  %vm657_vm2 = vcmask (!%p188_p2), 64512  }
   0x6   : > { %191 = sbr.rel (%p188_p2) target bundleno = 1000 (0x3e8), region = 40  ;;  %293 = vst.msk [vmem:[#allocation2 + $0x10] sm:$0xff] (!%p188_p2), %vm289_vm0, %v1686_v0  ;;  %290 = vst.msk [vmem:[#allocation2] sm:$0xff] (!%p188_p2), %vm289_vm0, %v1686_v0  ;;  %s1688_s26 = smov (!%p188_p2), 4   ;;  %v720_v53 = vld [vmem:[%s2268_s1] sm:$0xff] (!%p188_p2)  ;;  %v721_v54 = vld [vmem:[%s2268_s1 + $0x8] sm:$0xff] (!%p188_p2) }
   0x7   : > { %294 = vst.msk [vmem:[#allocation2 + $0x18] sm:$0x3] (!%p188_p2), %vm291_vm1, %v1686_v0  ;;  %292 = vst.msk [vmem:[#allocation2 + $0x8] sm:$0x3] (!%p188_p2), %vm291_vm1, %v1686_v0  ;;  %s1689_s27 = smov (!%p188_p2), 24   ;;  %s1690_s28 = smov (!%p188_p2), 8   ;;  %v1632_v55 = vpack.c.bf16 (!%p188_p2), %v721_v54, %v720_v53 }
   0x8   : > { %295 = vst.msk [vmem:[#allocation2 + $0x20] sm:$0xff] (!%p188_p2), %vm289_vm0, %v1686_v0  ;;  %297 = vst.msk [vmem:[#allocation2 + $0x30] sm:$0xff] (!%p188_p2), %vm289_vm0, %v1686_v0  ;;  %s1691_s29 = smov (!%p188_p2), 12   ;;  %s1692_s30 = smov (!%p188_p2), 16   ;;  %v722_v57 = vld [vmem:[%s2268_s1 + $0x10] sm:$0xff] (!%p188_p2)  ;;  %v723_v58 = vld [vmem:[%s2268_s1 + $0x18] sm:$0xff] (!%p188_p2) }
   0x9   : > { %296 = vst.msk [vmem:[#allocation2 + $0x28] sm:$0x3] (!%p188_p2), %vm291_vm1, %v1686_v0  ;;  %298 = vst.msk [vmem:[#allocation2 + $0x38] sm:$0x3] (!%p188_p2), %vm291_vm1, %v1686_v0  ;;  %s1693_s6 = smov (!%p188_p2), 20   ;;  %1633 = vmatprep.subr.bf16.mxu0 (!%p188_p2), %v1632_v55  ;;  %v1636_v59 = vpack.c.bf16 (!%p188_p2), %v723_v58, %v722_v57  ;;  %vm757_vm3 = vcmask (!%p188_p2), 1043456  }
   0xa   : > { %299 = vst.msk [vmem:[#allocation2 + $0x40] sm:$0xff] (!%p188_p2), %vm289_vm0, %v1686_v0  ;;  %301 = vst.msk [vmem:[#allocation2 + $0x50] sm:$0xff] (!%p188_p2), %vm289_vm0, %v1686_v0  ;;  %1635 = vmatpush3.bf16.msra.mxu0 (!%p188_p2), %v1632_v55  ;;  %v724_v60 = vld [vmem:[%s2268_s1 + $0x20] sm:$0xf] (!%p188_p2)  ;;  %s1694_s17 = smov (!%p188_p2), 28   ;;  %s1695_s20 = smov (!%p188_p2), 32  }
   0xb   : > { %300 = vst.msk [vmem:[#allocation2 + $0x48] sm:$0x3] (!%p188_p2), %vm291_vm1, %v1686_v0  ;;  %302 = vst.msk [vmem:[#allocation2 + $0x58] sm:$0x3] (!%p188_p2), %vm291_vm1, %v1686_v0  ;;  %1637 = vmatprep.subr.bf16.mxu0 (!%p188_p2), %v1636_v59  ;;  %vm666_vm4 = vcmask (!%p188_p2), 97280   ;;  %vm675_vm5 = vcmask (!%p188_p2), 130048  }
   0xc   : > { %303 = vst.msk [vmem:[#allocation2 + $0x60] sm:$0xff] (!%p188_p2), %vm289_vm0, %v1686_v0  ;;  %305 = vst.msk [vmem:[#allocation2 + $0x70] sm:$0xff] (!%p188_p2), %vm289_vm0, %v1686_v0  ;;  %vm684_vm6 = vcmask (!%p188_p2), 162816   ;;  %vm693_vm7 = vcmask (!%p188_p2), 195584   ;;  %vm702_vm8 = vcmask (!%p188_p2), 228352   ;;  %vm711_vm9 = vcmask (!%p188_p2), 261120  }
   0xd   : > { %304 = vst.msk [vmem:[#allocation2 + $0x68] sm:$0x3] %vm291_vm1, %v1686_v0  ;;  %306 = vst.msk [vmem:[#allocation2 + $0x78] sm:$0x3] %vm291_vm1, %v1686_v0  ;;  %s2275_s19 = smov (!%p1738_p3, %s1518_s19), 1  ;;  %vm732_vm10 = vcmask 293888  }
   0xe   : > { %307 = vst.msk [vmem:[#allocation2 + $0x80] sm:$0xff] %vm289_vm0, %v1686_v0  ;;  %309 = vst.msk [vmem:[#allocation2 + $0x90] sm:$0xff] %vm289_vm0, %v1686_v0  ;;  %s1548_s21 = sshll.u32 %s2275_s19, 7  ;;  %v328_v25 = vld [vmem:[#allocation2 + $0x1] sm:$0xff]  ;;  %1639 = vmatpush3.bf16.msra.mxu0 %v1636_v59  ;;  %vm875_vm11 = vcmask 58368   ;;  %s1697_s22 = smov 56  }
   0xf   : > { %308 = vst.msk [vmem:[#allocation2 + $0x88] sm:$0x3] %vm291_vm1, %v1686_v0  ;;  %310 = vst.msk [vmem:[#allocation2 + $0x98] sm:$0x3] %vm291_vm1, %v1686_v0  ;;  %s219_s24 = scalar_lea.vmem %s2267_s0, %s1548_s21  ;;  %v336_v27 = vld [vmem:[#allocation2 + $0x2] sm:$0xff]  ;;  %1588 = vmatprep.subr.msk.mxu0 %vm757_vm3, %v724_v60  ;;  %s1696_s21 = smov 48  }
  0x10   : > { %v225_v1 = vld [vmem:[%s219_s24] sm:$0xff]  ;;  %v226_v2 = vld [vmem:[%s219_s24 + $0x8] sm:$0xff]  ;;  %v227_v3 = vld [vmem:[%s219_s24 + $0x10] sm:$0xff]  ;;  %874 = vst.msk [vmem:[#allocation3] sm:$0xff] %vm657_vm2, %v1686_v0  ;;  %vm1265_vm12 = vcmask 326656   ;;  %vm1274_vm13 = vcmask 392192  }
  0x11   : > { %v241_v4 = vmax.f32 %v225_v1, %v226_v2  ;;  %v228_v5 = vld [vmem:[%s219_s24 + $0x18] sm:$0xff]  ;;  %v229_v6 = vld [vmem:[%s219_s24 + $0x20] sm:$0xff]  ;;  %v230_v7 = vld [vmem:[%s219_s24 + $0x28] sm:$0xff]  ;;  %877 = vst.msk [vmem:[#allocation3 + $0x10] sm:$0xff] %vm657_vm2, %v1686_v0  ;;  %vm1283_vm14 = vcmask 457728   ;;  %vm1292_vm15 = vcmask 523264  }
  0x12   : > { %v243_v8 = vmax.f32 %v229_v6, %v230_v7  ;;  %v231_v9 = vld [vmem:[%s219_s24 + $0x30] sm:$0xff]  ;;  %v232_v10 = vld [vmem:[%s219_s24 + $0x38] sm:$0xff]  ;;  %v242_v11 = vmax.f32 %v227_v3, %v228_v5  ;;  %v233_v13 = vld [vmem:[%s219_s24 + $0x40] sm:$0xff]  ;;  %879 = vst.msk [vmem:[#allocation3 + $0x20] sm:$0xff] %vm657_vm2, %v1686_v0  ;;  %1589 = vmatpush3.msk.msra.mxu0 %vm757_vm3, %v724_v60 }
  0x13   : > { %257 = vrot.lane.b32.xlu0 %v241_v4, %s1687_s25  ;;  %v244_v12 = vmax.f32 %v231_v9, %v232_v10  ;;  %v234_v14 = vld [vmem:[%s219_s24 + $0x48] sm:$0xff]  ;;  %v235_v15 = vld [vmem:[%s219_s24 + $0x50] sm:$0xff]  ;;  %v236_v16 = vld [vmem:[%s219_s24 + $0x58] sm:$0xff]  ;;  %881 = vst.msk [vmem:[#allocation3 + $0x30] sm:$0xff] %vm657_vm2, %v1686_v0 }
  0x14   : > { %261 = vrot.lane.b32.xlu1 %v243_v8, %s1687_s25  ;;  %v245_v17 = vmax.f32 %v233_v13, %v234_v14  ;;  %v246_v18 = vmax.f32 %v235_v15, %v236_v16  ;;  %v237_v19 = vld [vmem:[%s219_s24 + $0x60] sm:$0xff]  ;;  %v238_v20 = vld [vmem:[%s219_s24 + $0x68] sm:$0xff]  ;;  %v239_v21 = vld [vmem:[%s219_s24 + $0x70] sm:$0xff]  ;;  %883 = vst.msk [vmem:[#allocation3 + $0x40] sm:$0xff] %vm657_vm2, %v1686_v0 }
  0x15   : > { %v240_v22 = vld [vmem:[%s219_s24 + $0x78] sm:$0xff]  ;;  %v247_v23 = vmax.f32 %v237_v19, %v238_v20  ;;  %v376_v26 = vld [vmem:[#allocation2 + $0x90] sm:$0xff]  ;;  %885 = vst.msk [vmem:[#allocation3 + $0x50] sm:$0xff] %vm657_vm2, %v1686_v0  ;;  %887 = vst.msk [vmem:[#allocation3 + $0x60] sm:$0xff] %vm657_vm2, %v1686_v0 }
  0x16   : > { %v248_v24 = vmax.f32 %v239_v21, %v240_v22  ;;  %889 = vst.msk [vmem:[#allocation3 + $0x70] sm:$0xff] %vm657_vm2, %v1686_v0  ;;  %891 = vst.msk [vmem:[#allocation3 + $0x80] sm:$0xff] %vm657_vm2, %v1686_v0  ;;  %v384_v15 = vld [vmem:[#allocation2 + $0x91] sm:$0xff] }
  0x17   : > { %259 = vrot.lane.b32.xlu0 %v242_v11, %s1687_s25  ;;  %893 = vst.msk [vmem:[#allocation3 + $0x90] sm:$0xff] %vm657_vm2, %v1686_v0 }
  0x18   : > { %263 = vrot.lane.b32.xlu1 %v244_v12, %s1687_s25  ;;  %880 = vst.msk [vmem:[#allocation3 + $0x28] sm:$0x3] %vm875_vm11, %v1686_v0  ;;  %876 = vst.msk [vmem:[#allocation3 + $0x8] sm:$0x3] %vm875_vm11, %v1686_v0 }
  0x19   : > { %878 = vst.msk [vmem:[#allocation3 + $0x18] sm:$0x3] %vm875_vm11, %v1686_v0  ;;  %882 = vst.msk [vmem:[#allocation3 + $0x38] sm:$0x3] %vm875_vm11, %v1686_v0 }
  0x1a   : > { %884 = vst.msk [vmem:[#allocation3 + $0x48] sm:$0x3] %vm875_vm11, %v1686_v0  ;;  %886 = vst.msk [vmem:[#allocation3 + $0x58] sm:$0x3] %vm875_vm11, %v1686_v0 }
  0x1b   : > { %265 = vrot.lane.b32.xlu0 %v245_v17, %s1687_s25  ;;  %888 = vst.msk [vmem:[#allocation3 + $0x68] sm:$0x3] %vm875_vm11, %v1686_v0  ;;  %890 = vst.msk [vmem:[#allocation3 + $0x78] sm:$0x3] %vm875_vm11, %v1686_v0 }
  0x1c   : > { %267 = vrot.lane.b32.xlu1 %v246_v18, %s1687_s25  ;;  %892 = vst.msk [vmem:[#allocation3 + $0x88] sm:$0x3] %vm875_vm11, %v1686_v0  ;;  %894 = vst.msk [vmem:[#allocation3 + $0x98] sm:$0x3] %vm875_vm11, %v1686_v0 }
  0x1f   : > { %269 = vrot.lane.b32.xlu0 %v247_v23, %s1687_s25 }
  0x20   : > { %271 = vrot.lane.b32.xlu1 %v248_v24, %s1687_s25  ;;  %s1698_s25 = smov 40  }
  0x23   : > { %401 = vrot.lane.b32.xlu0 %v328_v25, %s1688_s26 }
  0x24   : > { %575 = vrot.lane.b32.xlu1 %v376_v26, %s1689_s27 }
  0x27   : > { %433 = vrot.lane.b32.xlu0 %v336_v27, %s1690_s28 }
  0x85   : > { %v258_v28 = vpop.permute.xlu0 %257 }
  0x86   : > { %v281_v29 = vmax.f32 %v241_v4, %v258_v28  ;;  %v262_v30 = vpop.permute.xlu1 %261 }
  0x87   : > { %v283_v31 = vmax.f32 %v243_v8, %v262_v30 }
  0x88   : > { %312 = vst.msk [vmem:[#allocation2 + $0x11] sm:$0xff] %vm289_vm0, %v281_v29 }
  0x89   : > { %v260_v32 = vpop.permute.xlu0 %259  ;;  %314 = vst.msk [vmem:[#allocation2 + $0x31] sm:$0xff] %vm289_vm0, %v283_v31  ;;  %v320_v31 = vld [vmem:[#allocation2] sm:$0xff] }
  0x8a   : > { %v282_v33 = vmax.f32 %v242_v11, %v260_v32  ;;  %v264_v34 = vpop.permute.xlu1 %263 }
  0x8b   : > { %v284_v35 = vmax.f32 %v244_v12, %v264_v34 }
  0x8c   : > { %313 = vst.msk [vmem:[#allocation2 + $0x21] sm:$0xff] %vm289_vm0, %v282_v33 }
  0x8d   : > { %315 = vst.msk [vmem:[#allocation2 + $0x41] sm:$0xff] %vm289_vm0, %v284_v35  ;;  %v266_v36 = vpop.permute.xlu0 %265 }
  0x8e   : > { %v285_v37 = vmax.f32 %v245_v17, %v266_v36  ;;  %v268_v38 = vpop.permute.xlu1 %267 }
  0x8f   : > { %v1817_v39 = vld [vmem:[#allocation2 + $0x10] sm:$0xff]  ;;  %v286_v41 = vmax.f32 %v246_v18, %v268_v38 }
  0x90   : > { %v329_v40 = vld [vmem:[#allocation2 + $0x11] sm:$0xff]  ;;  %465 = vrot.lane.b32.xlu0 %v1817_v39, %s1691_s29  ;;  %316 = vst.msk [vmem:[#allocation2 + $0x51] sm:$0xff] %vm289_vm0, %v285_v37 }
  0x91   : > { %403 = vrot.lane.b32.xlu1 %v329_v40, %s1688_s26  ;;  %317 = vst.msk [vmem:[#allocation2 + $0x61] sm:$0xff] %vm289_vm0, %v286_v41  ;;  %v270_v42 = vpop.permute.xlu0 %269  ;;  %v337_v45 = vld [vmem:[#allocation2 + $0x12] sm:$0xff] }
  0x92   : > { %v287_v43 = vmax.f32 %v247_v23, %v270_v42  ;;  %v272_v44 = vpop.permute.xlu1 %271  ;;  %v331_v49 = vld [vmem:[#allocation2 + $0x31] sm:$0xff] }
  0x93   : > { %v288_v46 = vmax.f32 %v248_v24, %v272_v44  ;;  %v353_v47 = vld [vmem:[#allocation2 + $0x21] sm:$0xff]  ;;  %v339_v51 = vld [vmem:[#allocation2 + $0x32] sm:$0xff] }
  0x94   : > { %497 = vrot.lane.b32.xlu0 %v329_v40, %s1692_s30  ;;  %318 = vst.msk [vmem:[#allocation2 + $0x71] sm:$0xff] %vm289_vm0, %v287_v43  ;;  %v1827_v48 = vld [vmem:[#allocation2 + $0x20] sm:$0xff]  ;;  %v1839_v52 = vld [vmem:[#allocation2 + $0x30] sm:$0xff] }
  0x95   : > { %435 = vrot.lane.b32.xlu1 %v337_v45, %s1690_s28  ;;  %319 = vst.msk [vmem:[#allocation2 + $0x81] sm:$0xff] %vm289_vm0, %v288_v46  ;;  %v361_v50 = vld [vmem:[#allocation2 + $0x22] sm:$0xff]  ;;  %v402_v11 = vpop.permute.xlu0 %401  ;;  %v392_v18 = vld [vmem:[#allocation2 + $0x92] sm:$0xff] }
  0x96   : > { %v1851_v56 = vld [vmem:[#allocation2 + $0x40] sm:$0xff]  ;;  %v1919_v12 = vpop.permute.xlu1 %575  ;;  %v649_v34 = vsel %vm289_vm0, %v320_v31, %v402_v11 }
  0x97   : > { %v332_v61 = vld [vmem:[#allocation2 + $0x41] sm:$0xff]  ;;  %v333_v62 = vld [vmem:[#allocation2 + $0x51] sm:$0xff] }
  0x98   : > { %499 = vrot.lane.b32.xlu0 %v353_v47, %s1692_s30  ;;  %v363_v63 = vld [vmem:[#allocation2 + $0x42] sm:$0xff]  ;;  %v341_v1 = vld [vmem:[#allocation2 + $0x52] sm:$0xff] }
  0x99   : > { %467 = vrot.lane.b32.xlu1 %v1827_v48, %s1691_s29  ;;  %v1878_v2 = vld [vmem:[#allocation2 + $0x50] sm:$0xff]  ;;  %v1884_v3 = vld [vmem:[#allocation2 + $0x60] sm:$0xff]  ;;  %v434_v13 = vpop.permute.xlu0 %433 }
  0x9a   : > { %v334_v4 = vld [vmem:[#allocation2 + $0x61] sm:$0xff]  ;;  %v658_v37 = vsel %vm657_vm2, %v649_v34, %v434_v13 }
  0x9b   : > { %v335_v5 = vld [vmem:[#allocation2 + $0x71] sm:$0xff]  ;;  %v365_v6 = vld [vmem:[#allocation2 + $0x62] sm:$0xff] }
  0x9c   : > { %407 = vrot.lane.b32.xlu0 %v331_v49, %s1688_s26  ;;  %v343_v7 = vld [vmem:[#allocation2 + $0x72] sm:$0xff]  ;;  %v351_v9 = vld [vmem:[#allocation2 + $0x80] sm:$0xff] }
  0x9d   : > { %405 = vrot.lane.b32.xlu1 %v353_v47, %s1688_s26  ;;  %v1902_v8 = vld [vmem:[#allocation2 + $0x70] sm:$0xff]  ;;  %v359_v10 = vld [vmem:[#allocation2 + $0x81] sm:$0xff] }
  0x9e   : > { %v367_v14 = vld [vmem:[#allocation2 + $0x82] sm:$0xff] }
  0xa0   : > { %531 = vrot.lane.b32.xlu0 %v361_v50, %s1693_s6 }
  0xa1   : > { %529 = vrot.lane.b32.xlu1 %v337_v45, %s1693_s6 }
  0xa4   : > { %439 = vrot.lane.b32.xlu0 %v339_v51, %s1690_s28 }
  0xa5   : > { %437 = vrot.lane.b32.xlu1 %v361_v50, %s1690_s28 }
  0xa8   : > { %563 = vrot.lane.b32.xlu0 %v1839_v52, %s1689_s27 }
  0xa9   : > { %561 = vrot.lane.b32.xlu1 %v1827_v48, %s1689_s27 }
  0xac   : > { %471 = vrot.lane.b32.xlu0 %v1851_v56, %s1691_s29 }
  0xad   : > { %469 = vrot.lane.b32.xlu1 %v1839_v52, %s1691_s29 }
  0xb0   : > { %595 = vrot.lane.b32.xlu0 %v331_v49, %s1694_s17 }
  0xb1   : > { %593 = vrot.lane.b32.xlu1 %v353_v47, %s1694_s17 }
  0xb4   : > { %409 = vrot.lane.b32.xlu0 %v332_v61, %s1688_s26 }
  0xb5   : > { %501 = vrot.lane.b32.xlu1 %v331_v49, %s1692_s30 }
  0xb8   : > { %533 = vrot.lane.b32.xlu0 %v339_v51, %s1693_s6 }
  0xb9   : > { %625 = vrot.lane.b32.xlu1 %v361_v50, %s1695_s20 }
  0xbc   : > { %411 = vrot.lane.b32.xlu0 %v333_v62, %s1688_s26 }
  0xbd   : > { %503 = vrot.lane.b32.xlu1 %v332_v61, %s1692_s30 }
  0xc0   : > { %535 = vrot.lane.b32.xlu0 %v363_v63, %s1693_s6 }
  0xc1   : > { %627 = vrot.lane.b32.xlu1 %v339_v51, %s1695_s20 }
  0xc4   : > { %443 = vrot.lane.b32.xlu0 %v341_v1, %s1690_s28 }
  0xc5   : > { %441 = vrot.lane.b32.xlu1 %v363_v63, %s1690_s28 }
  0xc8   : > { %567 = vrot.lane.b32.xlu0 %v1878_v2, %s1689_s27 }
  0xc9   : > { %565 = vrot.lane.b32.xlu1 %v1851_v56, %s1689_s27 }
  0xcc   : > { %475 = vrot.lane.b32.xlu0 %v1884_v3, %s1691_s29 }
  0xcd   : > { %473 = vrot.lane.b32.xlu1 %v1878_v2, %s1691_s29 }
  0xd0   : > { %599 = vrot.lane.b32.xlu0 %v333_v62, %s1694_s17 }
  0xd1   : > { %597 = vrot.lane.b32.xlu1 %v332_v61, %s1694_s17 }
  0xd4   : > { %413 = vrot.lane.b32.xlu0 %v334_v4, %s1688_s26 }
  0xd5   : > { %505 = vrot.lane.b32.xlu1 %v333_v62, %s1692_s30 }
  0xd8   : > { %537 = vrot.lane.b32.xlu0 %v341_v1, %s1693_s6 }
  0xd9   : > { %629 = vrot.lane.b32.xlu1 %v363_v63, %s1695_s20 }
  0xdc   : > { %415 = vrot.lane.b32.xlu0 %v335_v5, %s1688_s26  ;;  %s1699_s26 = smov 64  }
  0xdd   : > { %507 = vrot.lane.b32.xlu1 %v334_v4, %s1692_s30 }
  0xe0   : > { %539 = vrot.lane.b32.xlu0 %v365_v6, %s1693_s6 }
  0xe1   : > { %631 = vrot.lane.b32.xlu1 %v341_v1, %s1695_s20 }
  0xe4   : > { %447 = vrot.lane.b32.xlu0 %v343_v7, %s1690_s28 }
  0xe5   : > { %445 = vrot.lane.b32.xlu1 %v365_v6, %s1690_s28 }
  0xe8   : > { %571 = vrot.lane.b32.xlu0 %v1902_v8, %s1689_s27 }
  0xe9   : > { %569 = vrot.lane.b32.xlu1 %v1884_v3, %s1689_s27 }
  0xec   : > { %479 = vrot.lane.b32.xlu0 %v351_v9, %s1691_s29 }
  0xed   : > { %477 = vrot.lane.b32.xlu1 %v1902_v8, %s1691_s29 }
  0xf0   : > { %603 = vrot.lane.b32.xlu0 %v335_v5, %s1694_s17 }
  0xf1   : > { %601 = vrot.lane.b32.xlu1 %v334_v4, %s1694_s17 }
  0xf4   : > { %511 = vrot.lane.b32.xlu0 %v359_v10, %s1692_s30 }
  0xf5   : > { %509 = vrot.lane.b32.xlu1 %v335_v5, %s1692_s30 }
  0xf8   : > { %635 = vrot.lane.b32.xlu0 %v343_v7, %s1695_s20 }
  0xf9   : > { %633 = vrot.lane.b32.xlu1 %v365_v6, %s1695_s20 }
  0xfc   : > { %573 = vrot.lane.b32.xlu0 %v351_v9, %s1689_s27 }
  0xfd   : > { %541 = vrot.lane.b32.xlu1 %v343_v7, %s1693_s6 }
 0x100   : > { %605 = vrot.lane.b32.xlu0 %v359_v10, %s1694_s17 }
 0x101   : > { %543 = vrot.lane.b32.xlu1 %v367_v14, %s1693_s6 }
 0x102   : > { %v466_v17 = vpop.permute.xlu0 %465 }
 0x103   : > { %v404_v16 = vpop.permute.xlu1 %403  ;;  %v667_v38 = vsel %vm666_vm4, %v658_v37, %v466_v17 }
 0x104   : > { %637 = vrot.lane.b32.xlu0 %v367_v14, %s1695_s20  ;;  %v650_v45 = vsel %vm289_vm0, %v1817_v39, %v404_v16 }
 0x105   : > { %607 = vrot.lane.b32.xlu1 %v384_v15, %s1694_s17 }
 0x106   : > { %v498_v20 = vpop.permute.xlu0 %497 }
 0x107   : > { %v436_v19 = vpop.permute.xlu1 %435  ;;  %v676_v42 = vsel %vm675_vm5, %v667_v38, %v498_v20 }
 0x108   : > { %v659_v50 = vsel %vm657_vm2, %v650_v45, %v436_v19 }
 0x109   : > { %639 = vrot.lane.b32.xlu1 %v392_v18, %s1695_s20 }
 0x10a   : > { %v500_v22 = vpop.permute.xlu0 %499 }
 0x10b   : > { %v468_v21 = vpop.permute.xlu1 %467 }
 0x10c   : > { %v668_v53 = vsel %vm666_vm4, %v659_v50, %v468_v21 }
 0x10d   : > { %v677_v57 = vsel %vm675_vm5, %v668_v53, %v500_v22 }
 0x10e   : > { %v1926_v24 = vpop.permute.xlu0 %407 }
 0x10f   : > { %v406_v23 = vpop.permute.xlu1 %405 }
 0x110   : > { %v651_v11 = vsel %vm289_vm0, %v1827_v48, %v406_v23  ;;  %v652_v48 = vsel %vm289_vm0, %v1839_v52, %v1926_v24 }
 0x112   : > { %v532_v26 = vpop.permute.xlu0 %531 }
 0x113   : > { %v530_v25 = vpop.permute.xlu1 %529  ;;  %v686_v58 = vsel %vm684_vm6, %v677_v57, %v532_v26 }
 0x114   : > { %v685_v43 = vsel %vm684_vm6, %v676_v42, %v530_v25 }
 0x116   : > { %v1928_v28 = vpop.permute.xlu0 %439 }
 0x117   : > { %v438_v27 = vpop.permute.xlu1 %437  ;;  %v661_v23 = vsel %vm657_vm2, %v652_v48, %v1928_v28 }
 0x118   : > { %v660_v13 = vsel %vm657_vm2, %v651_v11, %v438_v27 }
 0x11a   : > { %v564_v30 = vpop.permute.xlu0 %563 }
 0x11b   : > { %v562_v29 = vpop.permute.xlu1 %561  ;;  %v695_v39 = vsel %vm693_vm7, %v686_v58, %v564_v30 }
 0x11c   : > { %v694_v44 = vsel %vm693_vm7, %v685_v43, %v562_v29 }
 0x11e   : > { %v472_v33 = vpop.permute.xlu0 %471 }
 0x11f   : > { %v470_v32 = vpop.permute.xlu1 %469  ;;  %v670_v26 = vsel %vm666_vm4, %v661_v23, %v472_v33  ;;  %v912_v23 = vld [vmem:[#allocation3 + $0x1] sm:$0xff] }
 0x120   : > { %v669_v14 = vsel %vm666_vm4, %v660_v13, %v470_v32  ;;  %985 = vrot.lane.b32.xlu0 %v912_v23, %s1690_s28 }
 0x122   : > { %v596_v36 = vpop.permute.xlu0 %595 }
 0x123   : > { %v594_v35 = vpop.permute.xlu1 %593  ;;  %v704_v59 = vsel %vm702_vm8, %v695_v39, %v596_v36 }
 0x124   : > { %v703_v46 = vsel %vm702_vm8, %v694_v44, %v594_v35 }
 0x126   : > { %v1933_v41 = vpop.permute.xlu0 %409 }
 0x127   : > { %v502_v40 = vpop.permute.xlu1 %501  ;;  %v653_v44 = vsel %vm289_vm0, %v1851_v56, %v1933_v41 }
 0x128   : > { %v678_v17 = vsel %vm675_vm5, %v669_v14, %v502_v40 }
 0x12a   : > { %v534_v49 = vpop.permute.xlu0 %533 }
 0x12b   : > { %v626_v47 = vpop.permute.xlu1 %625  ;;  %v687_v18 = vsel %vm684_vm6, %v678_v17, %v534_v49 }
 0x12c   : > { %v712_v51 = vsel %vm711_vm9, %v703_v46, %v626_v47 }
 0x12d   : > { %1590 = vmatprep.mubr.msk.f32.mxu0 %vm732_vm10, %v712_v51 }
 0x12e   : > { %v412_v55 = vpop.permute.xlu0 %411 }
 0x12f   : > { %v504_v54 = vpop.permute.xlu1 %503  ;;  %v654_v45 = vsel %vm289_vm0, %v1878_v2, %v412_v55 }
 0x130   : > { %v679_v30 = vsel %vm675_vm5, %v670_v26, %v504_v54  ;;  %v968_v26 = vld [vmem:[#allocation3 + $0x91] sm:$0xff] }
 0x132   : > { %v536_v61 = vpop.permute.xlu0 %535 }
 0x133   : > { %v628_v60 = vpop.permute.xlu1 %627  ;;  %v688_v31 = vsel %vm684_vm6, %v679_v30, %v536_v61 }
 0x134   : > { %v713_v62 = vsel %vm711_vm9, %v704_v59, %v628_v60 }
 0x135   : > { %1591 = vmatmul.mubr.msk.f32.vlgmr.msra.gmra.mrb[0].mxu0 %vm732_vm10, %v713_v62 }
 0x136   : > { %v444_v1 = vpop.permute.xlu0 %443 }
 0x137   : > { %v442_v63 = vpop.permute.xlu1 %441  ;;  %v663_v47 = vsel %vm657_vm2, %v654_v45, %v444_v1 }
 0x138   : > { %v662_v46 = vsel %vm657_vm2, %v653_v44, %v442_v63 }
 0x13a   : > { %v568_v5 = vpop.permute.xlu0 %567 }
 0x13b   : > { %v566_v4 = vpop.permute.xlu1 %565  ;;  %v697_v32 = vsel %vm693_vm7, %v688_v31, %v568_v5 }
 0x13c   : > { %v696_v19 = vsel %vm693_vm7, %v687_v18, %v566_v4 }
 0x13e   : > { %v476_v7 = vpop.permute.xlu0 %475 }
 0x13f   : > { %v474_v6 = vpop.permute.xlu1 %473  ;;  %v672_v50 = vsel %vm666_vm4, %v663_v47, %v476_v7  ;;  %v1301_v47 = vld [vmem:[%s2270_s3] sm:$0xff] }
 0x140   : > { %v671_v49 = vsel %vm666_vm4, %v662_v46, %v474_v6 }
 0x142   : > { %v600_v10 = vpop.permute.xlu0 %599 }
 0x143   : > { %v598_v9 = vpop.permute.xlu1 %597  ;;  %v706_v34 = vsel %vm702_vm8, %v697_v32, %v600_v10 }
 0x144   : > { %v705_v20 = vsel %vm702_vm8, %v696_v19, %v598_v9 }
 0x146   : > { %v414_v16 = vpop.permute.xlu0 %413 }
 0x147   : > { %v506_v15 = vpop.permute.xlu1 %505  ;;  %v655_v63 = vsel %vm289_vm0, %v1884_v3, %v414_v16 }
 0x148   : > { %v680_v54 = vsel %vm675_vm5, %v671_v49, %v506_v15  ;;  %v1302_v49 = vld [vmem:[%s2270_s3 + $0x8] sm:$0xff] }
 0x14a   : > { %v538_v22 = vpop.permute.xlu0 %537 }
 0x14b   : > { %v630_v21 = vpop.permute.xlu1 %629  ;;  %v689_v58 = vsel %vm684_vm6, %v680_v54, %v538_v22  ;;  %v1304_v54 = vld [vmem:[%s2270_s3 + $0x18] sm:$0xff] }
 0x14c   : > { %v714_v25 = vsel %vm711_vm9, %v705_v20, %v630_v21 }
 0x14d   : > { %1593 = vmatprep.mubr.msk.f32.mxu0 %vm732_vm10, %v714_v25 }
 0x14e   : > { %v416_v29 = vpop.permute.xlu0 %415 }
 0x14f   : > { %v508_v27 = vpop.permute.xlu1 %507  ;;  %v656_v9 = vsel %vm289_vm0, %v1902_v8, %v416_v29  ;;  %v2032_v29 = vld [vmem:[%s2269_s2] ss:$0 sm:$0xff]  ;;  %vm1317_vm0 = vcmask 588800  }
 0x150   : > { %v681_v57 = vsel %vm675_vm5, %v672_v50, %v508_v27  ;;  %v920_v27 = vld [vmem:[#allocation3 + $0x2] sm:$0xff]  ;;  %v1640_v50 = vpack.c.bf16 %v1302_v49, %v1301_v47 }
 0x151   : > { %1017 = vrot.lane.b32.xlu0 %v920_v27, %s1692_s30 }
 0x152   : > { %v540_v36 = vpop.permute.xlu0 %539  ;;  %1641 = vmatprep.subr.bf16.mxu1 %v1640_v50 }
 0x153   : > { %v632_v35 = vpop.permute.xlu1 %631  ;;  %v690_v56 = vsel %vm684_vm6, %v681_v57, %v540_v36  ;;  %1643 = vmatpush3.bf16.msra.mxu1 %v1640_v50 }
 0x154   : > { %v715_v52 = vsel %vm711_vm9, %v706_v34, %v632_v35 }
 0x155   : > { %1594 = vmatmul.mubr.msk.f32.gmra.mrb[2].mxu0 %vm732_vm10, %v715_v52 }
 0x156   : > { %v448_v28 = vpop.permute.xlu0 %447 }
 0x157   : > { %v446_v24 = vpop.permute.xlu1 %445  ;;  %v665_v14 = vsel %vm657_vm2, %v656_v9, %v448_v28 }
 0x158   : > { %v664_v5 = vsel %vm657_vm2, %v655_v63, %v446_v24 }
 0x15a   : > { %v572_v33 = vpop.permute.xlu0 %571 }
 0x15b   : > { %v570_v37 = vpop.permute.xlu1 %569  ;;  %v699_v41 = vsel %vm693_vm7, %v690_v56, %v572_v33  ;;  %v1305_v56 = vld [vmem:[%s2270_s3 + $0x20] sm:$0xff] }
 0x15c   : > { %v698_v2 = vsel %vm693_vm7, %v689_v58, %v570_v37 }
 0x15e   : > { %v480_v40 = vpop.permute.xlu0 %479 }
 0x15f   : > { %v478_v38 = vpop.permute.xlu1 %477  ;;  %v674_v15 = vsel %vm666_vm4, %v665_v14, %v480_v40 }
 0x160   : > { %v673_v6 = vsel %vm666_vm4, %v664_v5, %v478_v38 }
 0x162   : > { %v604_v43 = vpop.permute.xlu0 %603 }
 0x163   : > { %v602_v42 = vpop.permute.xlu1 %601  ;;  %v708_v39 = vsel %vm702_vm8, %v699_v41, %v604_v43 }
 0x164   : > { %v707_v55 = vsel %vm702_vm8, %v698_v2, %v602_v42  ;;  %v1306_v2 = vld [vmem:[%s2270_s3 + $0x28] sm:$0xff] }
 0x165   : > { %v1648_v41 = vpack.c.bf16 %v1306_v2, %v1305_v56 }
 0x166   : > { %v512_v53 = vpop.permute.xlu0 %511 }
 0x167   : > { %v510_v51 = vpop.permute.xlu1 %509  ;;  %v683_v3 = vsel %vm675_vm5, %v674_v15, %v512_v53  ;;  %v1303_v53 = vld [vmem:[%s2270_s3 + $0x10] sm:$0xff] }
 0x168   : > { %v682_v7 = vsel %vm675_vm5, %v673_v6, %v510_v51  ;;  %v1644_v57 = vpack.c.bf16 %v1304_v54, %v1303_v53 }
 0x16a   : > { %v636_v60 = vpop.permute.xlu0 %635  ;;  %1645 = vmatprep.subr.bf16.mxu1 %v1644_v57 }
 0x16b   : > { %v634_v59 = vpop.permute.xlu1 %633  ;;  %v717_v62 = vsel %vm711_vm9, %v708_v39, %v636_v60  ;;  %1647 = vmatpush3.bf16.msra.mxu1 %v1644_v57  ;;  %v1307_v39 = vld [vmem:[%s2270_s3 + $0x30] sm:$0xff] }
 0x16c   : > { %v716_v61 = vsel %vm711_vm9, %v707_v55, %v634_v59  ;;  %1649 = vmatprep.subr.bf16.mxu1 %v1648_v41  ;;  %v1308_v59 = vld [vmem:[%s2270_s3 + $0x38] sm:$0xff] }
 0x16d   : > { %1596 = vmatprep.mubr.msk.f32.mxu0 %vm732_vm10, %v716_v61  ;;  %v1652_v61 = vpack.c.bf16 %v1308_v59, %v1307_v39 }
 0x16e   : > { %1597 = vmatmul.mubr.msk.f32.gmra.mrb[4].mxu0 %vm732_vm10, %v717_v62  ;;  %v574_v4 = vpop.permute.xlu0 %573 }
 0x16f   : > { %v542_v1 = vpop.permute.xlu1 %541  ;;  %1651 = vmatpush3.bf16.msra.mxu1 %v1648_v41 }
 0x170   : > { %v691_v10 = vsel %vm684_vm6, %v682_v7, %v542_v1  ;;  %1653 = vmatprep.subr.bf16.mxu1 %v1652_v61  ;;  %v1309_v7 = vld [vmem:[%s2270_s3 + $0x40] sm:$0xff] }
 0x171   : > { %v700_v16 = vsel %vm693_vm7, %v691_v10, %v574_v4 }
 0x172   : > { %v606_v13 = vpop.permute.xlu0 %605 }
 0x173   : > { %v544_v11 = vpop.permute.xlu1 %543  ;;  %v709_v18 = vsel %vm702_vm8, %v700_v16, %v606_v13  ;;  %1655 = vmatpush3.bf16.msra.mxu1 %v1652_v61 }
 0x174   : > { %v692_v17 = vsel %vm684_vm6, %v683_v3, %v544_v11  ;;  %1618 = vmatprep.subr.mxu1 %v1309_v7 }
 0x175   : > { %v701_v21 = vsel %vm693_vm7, %v692_v17, %v1919_v12  ;;  %v960_v12 = vld [vmem:[#allocation3 + $0x90] sm:$0xff] }
 0x176   : > { %v638_v20 = vpop.permute.xlu0 %637  ;;  %1159 = vrot.lane.b32.xlu1 %v960_v12, %s1696_s21 }
 0x177   : > { %v608_v19 = vpop.permute.xlu1 %607  ;;  %v718_v8 = vsel %vm711_vm9, %v709_v18, %v638_v20  ;;  %1619 = vmatpush3.msra.mxu1 %v1309_v7 }
 0x178   : > { %1599 = vmatprep.mubr.msk.f32.mxu0 %vm732_vm10, %v718_v8  ;;  %v710_v22 = vsel %vm702_vm8, %v701_v21, %v608_v19 }
 0x17a   : > { %1191 = vrot.lane.b32.xlu1 %v968_v26, %s1697_s22 }
 0x17b   : > { %v640_v25 = vpop.permute.xlu1 %639 }
 0x17c   : > { %v719_v48 = vsel %vm711_vm9, %v710_v22, %v640_v25 }
 0x17d   : > { %1600 = vmatmul.mubr.msk.f32.gmra.mrb[6].mxu0 %vm732_vm10, %v719_v48 }
 0x1e8   : > { %v2148_v48 = vpop.permute.xlu1 %1159 }
 0x1ec   : > { %v2157_v26 = vpop.permute.xlu1 %1191 }
 0x208   : > { %v1592_v0 = vpop.f32.mrb[0].mxu0 }
 0x209   : > { %v833_v30 = vadd.f32 %v1592_v0, %v2032_v29  ;;  %v827_v31 = vpop.f32.mrb[1].mxu0  ;;  %v976_v0 = vld [vmem:[#allocation3 + $0x92] sm:$0xff] }
 0x20a   : > { %v828_v32 = vadd.f32 %v2032_v29, %v827_v31 }
 0x20b   : > { %v867_v34 = vmax.f32 %v833_v30, 0.0 }
 0x20c   : > { %v866_v35 = vmax.f32 %v828_v32, 0.0 }
 0x20d   : > { %897 = vst.msk [vmem:[#allocation3 + $0x21] sm:$0xff] %vm657_vm2, %v867_v34 }
 0x20e   : > { %896 = vst.msk [vmem:[#allocation3 + $0x11] sm:$0xff] %vm657_vm2, %v866_v35 }
 0x214   : > { %v937_v36 = vld [vmem:[#allocation3 + $0x21] sm:$0xff] }
 0x215   : > { %v2038_v52 = vld [vmem:[#allocation3 + $0x20] sm:$0xff]  ;;  %1083 = vrot.lane.b32.xlu0 %v937_v36, %s1695_s20  ;;  %v2045_v28 = vld [vmem:[#allocation3 + $0x10] sm:$0xff] }
 0x216   : > { %1051 = vrot.lane.b32.xlu1 %v2038_v52, %s1689_s27  ;;  %v945_v24 = vld [vmem:[#allocation3 + $0x22] sm:$0xff]  ;;  %v936_v37 = vld [vmem:[#allocation3 + $0x11] sm:$0xff] }
 0x217   : > { %v921_v45 = vld [vmem:[#allocation3 + $0x12] sm:$0xff] }
 0x219   : > { %1115 = vrot.lane.b32.xlu0 %v945_v24, %s1698_s25 }
 0x21a   : > { %989 = vrot.lane.b32.xlu1 %v937_v36, %s1690_s28 }
 0x21d   : > { %1049 = vrot.lane.b32.xlu0 %v2045_v28, %s1689_s27 }
 0x21e   : > { %1021 = vrot.lane.b32.xlu1 %v945_v24, %s1692_s30 }
 0x221   : > { %1081 = vrot.lane.b32.xlu0 %v936_v37, %s1695_s20 }
 0x222   : > { %1145 = vrot.lane.b32.xlu1 %v2038_v52, %s1696_s21 }
 0x226   : > { %1177 = vrot.lane.b32.xlu1 %v937_v36, %s1697_s22 }
 0x228   : > { %v1595_v33 = vpop.f32.mrb[2].mxu0 }
 0x229   : > { %v843_v38 = vadd.f32 %v1595_v33, %v2032_v29  ;;  %v837_v40 = vpop.f32.mrb[3].mxu0 }
 0x22a   : > { %1209 = vrot.lane.b32.xlu1 %v945_v24, %s1699_s26  ;;  %v838_v42 = vadd.f32 %v2032_v29, %v837_v40 }
 0x22b   : > { %v869_v43 = vmax.f32 %v843_v38, 0.0  ;;  %v904_v38 = vld [vmem:[#allocation3] sm:$0xff] }
 0x22c   : > { %v868_v44 = vmax.f32 %v838_v42, 0.0 }
 0x22d   : > { %899 = vst.msk [vmem:[#allocation3 + $0x41] sm:$0xff] %vm657_vm2, %v869_v43 }
 0x22e   : > { %987 = vrot.lane.b32.xlu1 %v936_v37, %s1690_s28  ;;  %898 = vst.msk [vmem:[#allocation3 + $0x31] sm:$0xff] %vm657_vm2, %v868_v44 }
 0x232   : > { %1019 = vrot.lane.b32.xlu1 %v921_v45, %s1692_s30 }
 0x234   : > { %v2061_v46 = vld [vmem:[#allocation3 + $0x40] sm:$0xff] }
 0x235   : > { %1055 = vrot.lane.b32.xlu0 %v2061_v46, %s1689_s27  ;;  %v939_v51 = vld [vmem:[#allocation3 + $0x41] sm:$0xff]  ;;  %v915_v55 = vld [vmem:[#allocation3 + $0x31] sm:$0xff] }
 0x236   : > { %1113 = vrot.lane.b32.xlu1 %v921_v45, %s1698_s25  ;;  %v924_v58 = vld [vmem:[#allocation3 + $0x42] sm:$0xff]  ;;  %v923_v5 = vld [vmem:[#allocation3 + $0x32] sm:$0xff] }
 0x237   : > { %v2106_v9 = vld [vmem:[#allocation3 + $0x30] sm:$0xff] }
 0x239   : > { %993 = vrot.lane.b32.xlu0 %v939_v51, %s1690_s28 }
 0x23a   : > { %1087 = vrot.lane.b32.xlu1 %v939_v51, %s1695_s20 }
 0x23d   : > { %1119 = vrot.lane.b32.xlu0 %v924_v58, %s1698_s25 }
 0x23e   : > { %1025 = vrot.lane.b32.xlu1 %v924_v58, %s1692_s30 }
 0x241   : > { %991 = vrot.lane.b32.xlu0 %v915_v55, %s1690_s28  ;;  %v1598_v60 = vpop.f32.mrb[4].mxu0 }
 0x242   : > { %1149 = vrot.lane.b32.xlu1 %v2061_v46, %s1696_s21  ;;  %v853_v62 = vadd.f32 %v1598_v60, %v2032_v29  ;;  %v847_v63 = vpop.f32.mrb[5].mxu0 }
 0x243   : > { %v848_v1 = vadd.f32 %v2032_v29, %v847_v63 }
 0x244   : > { %v871_v4 = vmax.f32 %v853_v62, 0.0 }
 0x245   : > { %v870_v6 = vmax.f32 %v848_v1, 0.0  ;;  %1023 = vrot.lane.b32.xlu0 %v923_v5, %s1692_s30 }
 0x246   : > { %1181 = vrot.lane.b32.xlu1 %v939_v51, %s1697_s22  ;;  %901 = vst.msk [vmem:[#allocation3 + $0x61] sm:$0xff] %vm657_vm2, %v871_v4 }
 0x247   : > { %900 = vst.msk [vmem:[#allocation3 + $0x51] sm:$0xff] %vm657_vm2, %v870_v6 }
 0x249   : > { %1147 = vrot.lane.b32.xlu0 %v2106_v9, %s1696_s21 }
 0x24a   : > { %1213 = vrot.lane.b32.xlu1 %v924_v58, %s1699_s26 }
 0x24d   : > { %1179 = vrot.lane.b32.xlu0 %v915_v55, %s1697_s22  ;;  %v2118_v16 = vld [vmem:[#allocation3 + $0x60] sm:$0xff] }
 0x24e   : > { %1053 = vrot.lane.b32.xlu1 %v2106_v9, %s1689_s27  ;;  %v941_v17 = vld [vmem:[#allocation3 + $0x61] sm:$0xff]  ;;  %v917_v19 = vld [vmem:[#allocation3 + $0x51] sm:$0xff] }
 0x24f   : > { %v926_v18 = vld [vmem:[#allocation3 + $0x62] sm:$0xff]  ;;  %v925_v20 = vld [vmem:[#allocation3 + $0x52] sm:$0xff] }
 0x250   : > { %v1601_v10 = vpop.f32.mrb[6].mxu0  ;;  %v2134_v8 = vld [vmem:[#allocation3 + $0x50] sm:$0xff] }
 0x251   : > { %v863_v11 = vadd.f32 %v1601_v10, %v2032_v29  ;;  %1117 = vrot.lane.b32.xlu0 %v923_v5, %s1698_s25  ;;  %v857_v13 = vpop.f32.mrb[7].mxu0 }
 0x252   : > { %1085 = vrot.lane.b32.xlu1 %v915_v55, %s1695_s20  ;;  %v858_v14 = vadd.f32 %v2032_v29, %v857_v13  ;;  %v986_v29 = vpop.permute.xlu0 %985 }
 0x253   : > { %v873_v15 = vmax.f32 %v863_v11, 0.0  ;;  %v1233_v43 = vsel %vm657_vm2, %v904_v38, %v986_v29 }
 0x254   : > { %v872_v3 = vmax.f32 %v858_v14, 0.0 }
 0x255   : > { %903 = vst.msk [vmem:[#allocation3 + $0x81] sm:$0xff] %vm657_vm2, %v873_v15  ;;  %1059 = vrot.lane.b32.xlu0 %v2118_v16, %s1689_s27 }
 0x256   : > { %1211 = vrot.lane.b32.xlu1 %v923_v5, %s1699_s26  ;;  %902 = vst.msk [vmem:[#allocation3 + $0x71] sm:$0xff] %vm657_vm2, %v872_v3  ;;  %v1018_v31 = vpop.permute.xlu0 %1017 }
 0x257   : > { %v1241_v44 = vsel %vm675_vm5, %v1233_v43, %v1018_v31 }
 0x259   : > { %997 = vrot.lane.b32.xlu0 %v941_v17, %s1690_s28 }
 0x25a   : > { %1091 = vrot.lane.b32.xlu1 %v941_v17, %s1695_s20 }
 0x25c   : > { %v935_v21 = vld [vmem:[#allocation3 + $0x80] sm:$0xff] }
 0x25d   : > { %1123 = vrot.lane.b32.xlu0 %v926_v18, %s1698_s25  ;;  %v951_v22 = vld [vmem:[#allocation3 + $0x82] sm:$0xff]  ;;  %v2150_v12 = vld [vmem:[#allocation3 + $0x70] sm:$0xff] }
 0x25e   : > { %1029 = vrot.lane.b32.xlu1 %v926_v18, %s1692_s30  ;;  %v943_v25 = vld [vmem:[#allocation3 + $0x81] sm:$0xff]  ;;  %v942_v23 = vld [vmem:[#allocation3 + $0x71] sm:$0xff] }
 0x25f   : > { %v950_v27 = vld [vmem:[#allocation3 + $0x72] sm:$0xff] }
 0x261   : > { %995 = vrot.lane.b32.xlu0 %v917_v19, %s1690_s28 }
 0x262   : > { %1153 = vrot.lane.b32.xlu1 %v2118_v16, %s1696_s21 }
 0x265   : > { %1027 = vrot.lane.b32.xlu0 %v925_v20, %s1692_s30 }
 0x266   : > { %1185 = vrot.lane.b32.xlu1 %v941_v17, %s1697_s22 }
 0x269   : > { %1151 = vrot.lane.b32.xlu0 %v2134_v8, %s1696_s21 }
 0x26a   : > { %1217 = vrot.lane.b32.xlu1 %v926_v18, %s1699_s26 }
 0x26d   : > { %1183 = vrot.lane.b32.xlu0 %v917_v19, %s1697_s22 }
 0x26e   : > { %1057 = vrot.lane.b32.xlu1 %v2134_v8, %s1689_s27 }
 0x271   : > { %1121 = vrot.lane.b32.xlu0 %v925_v20, %s1698_s25 }
 0x272   : > { %1089 = vrot.lane.b32.xlu1 %v917_v19, %s1695_s20 }
 0x275   : > { %1063 = vrot.lane.b32.xlu0 %v935_v21, %s1689_s27 }
 0x276   : > { %1215 = vrot.lane.b32.xlu1 %v925_v20, %s1699_s26 }
 0x279   : > { %1095 = vrot.lane.b32.xlu0 %v943_v25, %s1695_s20 }
 0x27a   : > { %1127 = vrot.lane.b32.xlu1 %v951_v22, %s1698_s25 }
 0x27d   : > { %1157 = vrot.lane.b32.xlu0 %v935_v21, %s1696_s21 }
 0x27e   : > { %1061 = vrot.lane.b32.xlu1 %v2150_v12, %s1689_s27 }
 0x281   : > { %1189 = vrot.lane.b32.xlu0 %v943_v25, %s1697_s22 }
 0x282   : > { %1093 = vrot.lane.b32.xlu1 %v942_v23, %s1695_s20 }
 0x285   : > { %999 = vrot.lane.b32.xlu0 %v942_v23, %s1690_s28 }
 0x286   : > { %1125 = vrot.lane.b32.xlu1 %v950_v27, %s1698_s25 }
 0x287   : > { %v1084_v35 = vpop.permute.xlu0 %1083 }
 0x288   : > { %v1052_v30 = vpop.permute.xlu1 %1051 }
 0x289   : > { %1031 = vrot.lane.b32.xlu0 %v950_v27, %s1692_s30  ;;  %s1549_s30 = sshll.u32 %s2275_s19, 6 }
 0x28a   : > { %1223 = vrot.lane.b32.xlu1 %v976_v0, %s1699_s26 }
 0x28b   : > { %v1116_v24 = vpop.permute.xlu0 %1115 }
 0x28c   : > { %v990_v32 = vpop.permute.xlu1 %989 }
 0x28d   : > { %1155 = vrot.lane.b32.xlu0 %v2150_v12, %s1696_s21  ;;  %v1235_v11 = vsel %vm657_vm2, %v2038_v52, %v990_v32 }
 0x28f   : > { %v1050_v40 = vpop.permute.xlu0 %1049 }
 0x290   : > { %v1022_v34 = vpop.permute.xlu1 %1021  ;;  %v1249_v49 = vsel %vm693_vm7, %v1241_v44, %v1050_v40 }
 0x291   : > { %1187 = vrot.lane.b32.xlu0 %v942_v23, %s1697_s22  ;;  %v1243_v13 = vsel %vm675_vm5, %v1235_v11, %v1022_v34  ;;  %s224_s22 = scalar_lea.vmem %s2272_s5, %s1549_s30 }
 0x293   : > { %v1082_v45 = vpop.permute.xlu0 %1081 }
 0x294   : > { %v1146_v36 = vpop.permute.xlu1 %1145  ;;  %v1257_v50 = vsel %vm711_vm9, %v1249_v49, %v1082_v45 }
 0x295   : > { %1219 = vrot.lane.b32.xlu0 %v950_v27, %s1699_s26 }
 0x298   : > { %v1178_v37 = vpop.permute.xlu1 %1177 }
 0x299   : > { %1221 = vrot.lane.b32.xlu0 %v951_v22, %s1699_s26 }
 0x29c   : > { %v1210_v33 = vpop.permute.xlu1 %1209 }
 0x2a0   : > { %v988_v42 = vpop.permute.xlu1 %987 }
 0x2a1   : > { %v1234_v63 = vsel %vm657_vm2, %v2045_v28, %v988_v42 }
 0x2a4   : > { %v1020_v47 = vpop.permute.xlu1 %1019 }
 0x2a5   : > { %v1242_v5 = vsel %vm675_vm5, %v1234_v63, %v1020_v47 }
 0x2a6   : > { %v1250_v6 = vsel %vm693_vm7, %v1242_v5, %v1052_v30 }
 0x2a7   : > { %v1056_v53 = vpop.permute.xlu0 %1055  ;;  %v1258_v14 = vsel %vm711_vm9, %v1250_v6, %v1084_v35 }
 0x2a8   : > { %v1114_v51 = vpop.permute.xlu1 %1113  ;;  %v1267_v18 = vsel %vm1265_vm12, %v1258_v14, %v1116_v24 }
 0x2a9   : > { %v1266_v54 = vsel %vm1265_vm12, %v1257_v50, %v1114_v51 }
 0x2aa   : > { %v1275_v57 = vsel %vm1274_vm13, %v1266_v54, %v1146_v36 }
 0x2ab   : > { %v1284_v58 = vsel %vm1283_vm14, %v1275_v57, %v1178_v37  ;;  %v994_v2 = vpop.permute.xlu0 %993 }
 0x2ac   : > { %v1088_v56 = vpop.permute.xlu1 %1087  ;;  %v1293_v41 = vsel %vm1292_vm15, %v1284_v58, %v1210_v33  ;;  %v1237_v45 = vsel %vm657_vm2, %v2061_v46, %v994_v2 }
 0x2ad   : > { %1620 = vmatprep.mubr.msk.f32.mxu1 %vm1317_vm0, %v1293_v41 }
 0x2af   : > { %v1120_v39 = vpop.permute.xlu0 %1119 }
 0x2b0   : > { %v1026_v55 = vpop.permute.xlu1 %1025 }
 0x2b1   : > { %v1245_v47 = vsel %vm675_vm5, %v1237_v45, %v1026_v55 }
 0x2b3   : > { %v992_v60 = vpop.permute.xlu0 %991 }
 0x2b4   : > { %v1150_v59 = vpop.permute.xlu1 %1149  ;;  %v1236_v37 = vsel %vm657_vm2, %v2106_v9, %v992_v60 }
 0x2b7   : > { %v1024_v62 = vpop.permute.xlu0 %1023 }
 0x2b8   : > { %v1182_v61 = vpop.permute.xlu1 %1181  ;;  %v1244_v40 = vsel %vm675_vm5, %v1236_v37, %v1024_v62 }
 0x2b9   : > { %v1252_v42 = vsel %vm693_vm7, %v1244_v40, %v1056_v53 }
 0x2ba   : > { %v1260_v49 = vsel %vm711_vm9, %v1252_v42, %v1088_v56 }
 0x2bb   : > { %v1148_v4 = vpop.permute.xlu0 %1147  ;;  %v1269_v57 = vsel %vm1265_vm12, %v1260_v49, %v1120_v39 }
 0x2bc   : > { %v1214_v1 = vpop.permute.xlu1 %1213  ;;  %v1276_v20 = vsel %vm1274_vm13, %v1267_v18, %v1148_v4 }
 0x2bf   : > { %v1180_v10 = vpop.permute.xlu0 %1179 }
 0x2c0   : > { %v1054_v7 = vpop.permute.xlu1 %1053  ;;  %v1285_v52 = vsel %vm1283_vm14, %v1276_v20, %v1180_v10 }
 0x2c1   : > { %v1251_v15 = vsel %vm693_vm7, %v1243_v13, %v1054_v7 }
 0x2c3   : > { %v1118_v17 = vpop.permute.xlu0 %1117 }
 0x2c4   : > { %v1086_v3 = vpop.permute.xlu1 %1085 }
 0x2c5   : > { %v1259_v28 = vsel %vm711_vm9, %v1251_v15, %v1086_v3 }
 0x2c6   : > { %v1268_v19 = vsel %vm1265_vm12, %v1259_v28, %v1118_v17 }
 0x2c7   : > { %v1277_v21 = vsel %vm1274_vm13, %v1268_v19, %v1150_v59  ;;  %v1060_v25 = vpop.permute.xlu0 %1059 }
 0x2c8   : > { %v1212_v22 = vpop.permute.xlu1 %1211  ;;  %v1286_v23 = vsel %vm1283_vm14, %v1277_v21, %v1182_v61 }
 0x2c9   : > { %v1294_v27 = vsel %vm1292_vm15, %v1285_v52, %v1212_v22  ;;  %v1295_v29 = vsel %vm1292_vm15, %v1286_v23, %v1214_v1 }
 0x2ca   : > { %1621 = vmatmul.mubr.msk.f32.vlgmr.msra.gmra.mrb[0].mxu1 %vm1317_vm0, %v1294_v27 }
 0x2cb   : > { %1623 = vmatprep.mubr.msk.f32.mxu1 %vm1317_vm0, %v1295_v29  ;;  %v998_v30 = vpop.permute.xlu0 %997 }
 0x2cc   : > { %v1092_v0 = vpop.permute.xlu1 %1091  ;;  %v1239_v17 = vsel %vm657_vm2, %v2118_v16, %v998_v30 }
 0x2cf   : > { %v1124_v32 = vpop.permute.xlu0 %1123 }
 0x2d0   : > { %v1030_v31 = vpop.permute.xlu1 %1029 }
 0x2d3   : > { %v996_v35 = vpop.permute.xlu0 %995 }
 0x2d4   : > { %v1154_v34 = vpop.permute.xlu1 %1153  ;;  %v1238_v5 = vsel %vm657_vm2, %v2134_v8, %v996_v35  ;;  %v1247_v8 = vsel %vm675_vm5, %v1239_v17, %v1030_v31 }
 0x2d7   : > { %v1028_v24 = vpop.permute.xlu0 %1027 }
 0x2d8   : > { %v1186_v36 = vpop.permute.xlu1 %1185  ;;  %v1246_v10 = vsel %vm675_vm5, %v1238_v5, %v1028_v24  ;;  %v1537_v24 = vld [vmem:[%s2271_s4] ss:$0 sm:$0xff] }
 0x2d9   : > { %v1254_v15 = vsel %vm693_vm7, %v1246_v10, %v1060_v25 }
 0x2db   : > { %v1152_v38 = vpop.permute.xlu0 %1151 }
 0x2dc   : > { %v1218_v33 = vpop.permute.xlu1 %1217  ;;  %v1278_v53 = vsel %vm1274_vm13, %v1269_v57, %v1152_v38 }
 0x2df   : > { %v1184_v44 = vpop.permute.xlu0 %1183 }
 0x2e0   : > { %v1058_v43 = vpop.permute.xlu1 %1057  ;;  %v1287_v46 = vsel %vm1283_vm14, %v1278_v53, %v1184_v44 }
 0x2e1   : > { %v1253_v50 = vsel %vm693_vm7, %v1245_v47, %v1058_v43 }
 0x2e3   : > { %v1122_v54 = vpop.permute.xlu0 %1121 }
 0x2e4   : > { %v1090_v51 = vpop.permute.xlu1 %1089 }
 0x2e5   : > { %v1261_v9 = vsel %vm711_vm9, %v1253_v50, %v1090_v51 }
 0x2e6   : > { %v1270_v58 = vsel %vm1265_vm12, %v1261_v9, %v1122_v54 }
 0x2e7   : > { %v1279_v41 = vsel %vm1274_vm13, %v1270_v58, %v1154_v34  ;;  %v1064_v55 = vpop.permute.xlu0 %1063 }
 0x2e8   : > { %v1216_v2 = vpop.permute.xlu1 %1215  ;;  %v1288_v56 = vsel %vm1283_vm14, %v1279_v41, %v1186_v36 }
 0x2e9   : > { %v1296_v59 = vsel %vm1292_vm15, %v1287_v46, %v1216_v2  ;;  %v1297_v60 = vsel %vm1292_vm15, %v1288_v56, %v1218_v33 }
 0x2ea   : > { %1624 = vmatmul.mubr.msk.f32.gmra.mrb[2].mxu1 %vm1317_vm0, %v1296_v59 }
 0x2eb   : > { %1626 = vmatprep.mubr.msk.f32.mxu1 %vm1317_vm0, %v1297_v60  ;;  %v1096_v39 = vpop.permute.xlu0 %1095 }
 0x2ec   : > { %v1128_v62 = vpop.permute.xlu1 %1127 }
 0x2ef   : > { %v1158_v61 = vpop.permute.xlu0 %1157 }
 0x2f0   : > { %v1062_v1 = vpop.permute.xlu1 %1061 }
 0x2f1   : > { %v1255_v19 = vsel %vm693_vm7, %v1247_v8, %v1062_v1 }
 0x2f3   : > { %v1190_v63 = vpop.permute.xlu0 %1189 }
 0x2f4   : > { %v1094_v11 = vpop.permute.xlu1 %1093 }
 0x2f5   : > { %v1263_v21 = vsel %vm711_vm9, %v1255_v19, %v1094_v11 }
 0x2f7   : > { %v1000_v4 = vpop.permute.xlu0 %999 }
 0x2f8   : > { %v1240_v6 = vsel %vm657_vm2, %v2150_v12, %v1000_v4  ;;  %v1126_v18 = vpop.permute.xlu1 %1125  ;;  %v1262_v12 = vsel %vm711_vm9, %v1254_v15, %v1092_v0 }
 0x2f9   : > { %v1272_v22 = vsel %vm1265_vm12, %v1263_v21, %v1126_v18  ;;  %v1271_v25 = vsel %vm1265_vm12, %v1262_v12, %v1124_v32 }
 0x2fa   : > { %v1281_v0 = vsel %vm1274_vm13, %v1272_v22, %v1158_v61 }
 0x2fb   : > { %v1032_v7 = vpop.permute.xlu0 %1031  ;;  %v1290_v32 = vsel %vm1283_vm14, %v1281_v0, %v1190_v63 }
 0x2fc   : > { %v1248_v13 = vsel %vm675_vm5, %v1240_v6, %v1032_v7  ;;  %v1224_v31 = vpop.permute.xlu1 %1223 }
 0x2fd   : > { %v1256_v14 = vsel %vm693_vm7, %v1248_v13, %v1064_v55 }
 0x2fe   : > { %v1264_v28 = vsel %vm711_vm9, %v1256_v14, %v1096_v39 }
 0x2ff   : > { %v1156_v3 = vpop.permute.xlu0 %1155  ;;  %v1273_v52 = vsel %vm1265_vm12, %v1264_v28, %v1128_v62 }
 0x300   : > { %v1280_v16 = vsel %vm1274_vm13, %v1271_v25, %v1156_v3  ;;  %v1282_v23 = vsel %vm1274_vm13, %v1273_v52, %v2148_v48 }
 0x301   : > { %v1291_v34 = vsel %vm1283_vm14, %v1282_v23, %v2157_v26 }
 0x302   : > { %v1300_v48 = vsel %vm1292_vm15, %v1291_v34, %v1224_v31 }
 0x303   : > { %v1188_v20 = vpop.permute.xlu0 %1187 }
 0x304   : > { %v1289_v27 = vsel %vm1283_vm14, %v1280_v16, %v1188_v20 }
 0x307   : > { %v1220_v29 = vpop.permute.xlu0 %1219 }
 0x308   : > { %v1298_v30 = vsel %vm1292_vm15, %v1289_v27, %v1220_v29 }
 0x309   : > { %1627 = vmatmul.mubr.msk.f32.gmra.mrb[4].mxu1 %vm1317_vm0, %v1298_v30 }
 0x30b   : > { %v1222_v35 = vpop.permute.xlu0 %1221 }
 0x30c   : > { %v1299_v36 = vsel %vm1292_vm15, %v1290_v32, %v1222_v35 }
 0x30d   : > { %1629 = vmatprep.mubr.msk.f32.mxu1 %vm1317_vm0, %v1299_v36 }
 0x30e   : > { %1630 = vmatmul.mubr.msk.f32.gmra.mrb[6].mxu1 %vm1317_vm0, %v1300_v48 }
 0x39d   : > { %v1622_v37 = vpop.f32.mrb[0].mxu1 }
 0x39e   : > { %v1414_v33 = vadd.f32 %v1622_v37, %v1537_v24  ;;  %v1408_v38 = vpop.f32.mrb[1].mxu1 }
 0x39f   : > { %v1409_v26 = vadd.f32 %v1537_v24, %v1408_v38 }
 0x3a0   : > { %v1448_v40 = vmax.f32 %v1414_v33, 0.0 }
 0x3a1   : > { %v1447_v42 = vmax.f32 %v1409_v26, 0.0 }
 0x3a2   : > { %1456 = vst.msk [vmem:[%s224_s22 + $0x8] sm:$0xff] %vm657_vm2, %v1448_v40 }
 0x3a3   : > { %1455 = vst.msk [vmem:[%s224_s22] sm:$0xff] %vm657_vm2, %v1447_v42 }
 0x3bd   : > { %v1625_v43 = vpop.f32.mrb[2].mxu1 }
 0x3be   : > { %v1424_v44 = vadd.f32 %v1625_v43, %v1537_v24  ;;  %v1418_v45 = vpop.f32.mrb[3].mxu1 }
 0x3bf   : > { %v1419_v47 = vadd.f32 %v1537_v24, %v1418_v45 }
 0x3c0   : > { %v1450_v49 = vmax.f32 %v1424_v44, 0.0 }
 0x3c1   : > { %v1449_v50 = vmax.f32 %v1419_v47, 0.0 }
 0x3c2   : > { %1458 = vst.msk [vmem:[%s224_s22 + $0x18] sm:$0xff] %vm657_vm2, %v1450_v49 }
 0x3c3   : > { %1457 = vst.msk [vmem:[%s224_s22 + $0x10] sm:$0xff] %vm657_vm2, %v1449_v50 }
 0x3dc   : > { %v1628_v51 = vpop.f32.mrb[4].mxu1 }
 0x3dd   : > { %v1434_v54 = vadd.f32 %v1628_v51, %v1537_v24  ;;  %v1428_v9 = vpop.f32.mrb[5].mxu1 }
 0x3de   : > { %v1429_v57 = vadd.f32 %v1537_v24, %v1428_v9 }
 0x3df   : > { %v1452_v58 = vmax.f32 %v1434_v54, 0.0 }
 0x3e0   : > { %v1451_v53 = vmax.f32 %v1429_v57, 0.0 }
 0x3e1   : > { %1460 = vst.msk [vmem:[%s224_s22 + $0x28] sm:$0xff] %vm657_vm2, %v1452_v58  ;;  %v1631_v41 = vpop.f32.mrb[6].mxu1 }
 0x3e2   : > { %1459 = vst.msk [vmem:[%s224_s22 + $0x20] sm:$0xff] %vm657_vm2, %v1451_v53  ;;  %v1444_v46 = vadd.f32 %v1631_v41, %v1537_v24  ;;  %v1438_v2 = vpop.f32.mrb[7].mxu1 }
 0x3e3   : > { %v1439_v55 = vadd.f32 %v1537_v24, %v1438_v2 }
 0x3e4   : > { %v1454_v56 = vmax.f32 %v1444_v46, 0.0 }
 0x3e5   : > { %v1453_v59 = vmax.f32 %v1439_v55, 0.0 }
 0x3e6   : > { %1462 = vst.msk [vmem:[%s224_s22 + $0x38] sm:$0xff] %vm657_vm2, %v1454_v56 }
 0x3e7   : > { %1461 = vst.msk [vmem:[%s224_s22 + $0x30] sm:$0xff] %vm657_vm2, %v1453_v59 }
 0x3e8 PF: > { %s15_s18 = sadd.s32 1, %s1684_s18  }
 0x3e9   : > { %p12_p4 = scmp.ge.s32.totalorder %s15_s18, 4  }
 0x3eb   :  { %14 = sbr.rel (!%p12_p4) target bundleno = 1 (0x1), region = 74 }

</bundles_post_ra>
